<compile_context>
chip_gen: v7x
topology: tpu7x:2x2x1
jax: 0.10.0
libtpu: 0.0.40
codegen_flags: <defaults>
</compile_context>

<pallas_src>
import jax
import jax.numpy as jnp
from jax.experimental import pallas as pl
from jax.experimental.pallas import tpu as pltpu

LANE = 128     # hidden feature dims are padded to a multiple of this
SUBLANE = 8    # f32 sublane width: batch tile must be a multiple of this


def _round_up(n, m):
    return ((n + m - 1) // m) * m


def _cdiv(a, b):
    return -(-a // b)


def mlp_kernel(x_ref, w1_ref, b1_ref, w2_ref, b2_ref,
               w3_ref, b3_ref, w4_ref, b4_ref, o_ref):
    """Whole forward pass fused for one (tb, in_features) batch tile."""

    def linear(h, w_ref, b_ref):
        # Cast activations to the weight dtype (no-op for f32, bf16 for the
        # low-precision path); accumulate in f32, bias add in f32.
        return jnp.dot(h.astype(w_ref.dtype), w_ref[...],
                       preferred_element_type=jnp.float32) + b_ref[...]

    h = x_ref[...]
    h = jnp.maximum(linear(h, w1_ref, b1_ref), 0.0)
    h = jnp.maximum(linear(h, w2_ref, b2_ref), 0.0)
    h = jnp.maximum(linear(h, w3_ref, b3_ref), 0.0)
    o_ref[...] = linear(h, w4_ref, b4_ref).astype(o_ref.dtype)


def pad_params(params, *, lane=LANE, param_dtype=jnp.float32):
    """Zero-pad hidden feature dims to `lane` multiples.

    The first layer's fan_in and the last layer's fan_out are left unpadded so
    x and the output keep their true shapes in HBM.  Zero padding is
    semantics-preserving (padded bias entries are 0, so padded columns stay 0
    through bias/ReLU and contribute nothing downstream).
    """
    n = len(params)
    padded = []
    prev_out = params[0][0].shape[0]          # in_features, unpadded
    for idx, (w, b) in enumerate(params):
        fi, fo = w.shape
        fi_p = prev_out                        # matches previous layer's padded fan_out
        fo_p = fo if idx == n - 1 else _round_up(fo, lane)
        wp = jnp.zeros((fi_p, fo_p), param_dtype).at[:fi, :fo].set(w.astype(param_dtype))
        bp = jnp.zeros((1, fo_p), jnp.float32).at[:, :fo].set(
            b.reshape(1, -1).astype(jnp.float32))
        padded.append((wp, bp))
        prev_out = fo_p
    return padded


def mlp_forward(x, params, *, batch_tile=1024, param_dtype=jnp.float32,
                min_grid_steps=2):
    """x: (B, in_features) f32.  params: list of (W, b), W shape (fan_in, fan_out)."""
    B, in_features = x.shape
    out_features = params[-1][0].shape[1]

    (w1, b1), (w2, b2), (w3, b3), (w4, b4) = pad_params(
        params, param_dtype=param_dtype)

    # Balanced batch tiling: bounds batch padding to < SUBLANE rows per tile,
    # keeps tb a multiple of the sublane width, and (when the batch allows it)
    # guarantees >= min_grid_steps grid steps so "parallel" can shard across
    # both v7x TensorCores.
    n_tiles = max(1, _cdiv(B, batch_tile))
    if B >= min_grid_steps * SUBLANE:
        n_tiles = max(n_tiles, min_grid_steps)
    tb = _round_up(_cdiv(B, n_tiles), SUBLANE)
    b_pad = tb * _cdiv(B, tb)
    grid = (b_pad // tb,)

    # Only pad the batch dim (and only if needed) -- no feature-dim padding of x.
    x_p = x if b_pad == B else jnp.zeros((b_pad, in_features), x.dtype).at[:B, :].set(x)

    def resident(a):
        # Constant block index across the batch axis -> loaded once, stays in VMEM.
        return pl.BlockSpec(a.shape, lambda i: (0,) * a.ndim)

    # Cost estimate with the padded bytes/flops actually moved/computed.
    weights = [(w1, b1), (w2, b2), (w3, b3), (w4, b4)]
    flops = 0
    bytes_accessed = x_p.size * x_p.dtype.itemsize + b_pad * out_features * 4
    for w, b in weights:
        flops += 2 * b_pad * w.shape[0] * w.shape[1]
        bytes_accessed += w.size * w.dtype.itemsize + b.size * b.dtype.itemsize

    y_p = pl.pallas_call(
        mlp_kernel,
        out_shape=jax.ShapeDtypeStruct((b_pad, out_features), jnp.float32),
        grid=grid,
        in_specs=[
            pl.BlockSpec((tb, in_features), lambda i: (i, 0)),   # x: tiled over batch
            resident(w1), resident(b1),
            resident(w2), resident(b2),
            resident(w3), resident(b3),
            resident(w4), resident(b4),
        ],
        out_specs=pl.BlockSpec((tb, out_features), lambda i: (i, 0)),
        compiler_params=pltpu.CompilerParams(
            dimension_semantics=("parallel",)),
        cost_estimate=pl.CostEstimate(
            flops=flops, transcendentals=0, bytes_accessed=bytes_accessed),
    )(x_p, w1, b1, w2, b2, w3, b3, w4, b4)

    # Only batch padding (if any) needs slicing off; features are exact.
    return y_p if b_pad == B else y_p[:B]


def init_linear(key, fan_in, fan_out):
    # Mirrors nn.Linear's U(-1/sqrt(fan_in), 1/sqrt(fan_in)) init.
    kw, kb = jax.random.split(key)
    bound = 1.0 / jnp.sqrt(jnp.float32(fan_in))
    w = jax.random.uniform(kw, (fan_in, fan_out), jnp.float32, -bound, bound)
    b = jax.random.uniform(kb, (1, fan_out), jnp.float32, -bound, bound)
    return w, b


def reference_forward(x, params):
    h = x
    for i, (w, b) in enumerate(params):
        h = h @ w + b.reshape(1, -1)
        if i < len(params) - 1:
            h = jnp.maximum(h, 0.0)
    return h


if __name__ == "__main__":
    key = jax.random.PRNGKey(0)
    B, in_features, h1, h2, h3, out_features = 8, 32, 16, 16, 16, 2

    k_x, k1, k2, k3, k4 = jax.random.split(key, 5)
    x = jax.random.normal(k_x, (B, in_features), jnp.float32)

    params = [
        init_linear(k1, in_features, h1),
        init_linear(k2, h1, h2),
        init_linear(k3, h2, h3),
        init_linear(k4, h3, out_features),
    ]

    y_ref = reference_forward(x, params)

    # Exact-precision path (matches the f32 PyTorch module).
    y = mlp_forward(x, params)
    jax.block_until_ready(y)
    assert y.shape == (B, out_features)
    assert jnp.allclose(y, y_ref, atol=1e-5, rtol=1e-5)

    # bf16-weight / bf16-MXU-operand path (v6e/v7x perf option); f32 accumulate.
    y_bf16 = mlp_forward(x, params, param_dtype=jnp.bfloat16)
    jax.block_until_ready(y_bf16)
    assert y_bf16.shape == (B, out_features)
    assert jnp.allclose(y_bf16, y_ref, atol=5e-2, rtol=5e-2)

    print("KERNEL_OK")
</pallas_src>

<mosaic_0001>
module attributes {stable_mosaic.version = 11 : i64} {
  func.func @mlp_kernel(%arg0: i32, %arg1: memref<8x32xf32, #tpu.memory_space<vmem>>, %arg2: memref<32x128xf32, #tpu.memory_space<vmem>>, %arg3: memref<1x128xf32, #tpu.memory_space<vmem>>, %arg4: memref<128x128xf32, #tpu.memory_space<vmem>>, %arg5: memref<1x128xf32, #tpu.memory_space<vmem>>, %arg6: memref<128x128xf32, #tpu.memory_space<vmem>>, %arg7: memref<1x128xf32, #tpu.memory_space<vmem>>, %arg8: memref<128x2xf32, #tpu.memory_space<vmem>>, %arg9: memref<1x2xf32, #tpu.memory_space<vmem>>, %arg10: memref<8x2xf32, #tpu.memory_space<vmem>>) attributes {dimension_semantics = [#tpu.dimension_semantics<parallel>], iteration_bounds = array<i64: 1>, scalar_prefetch = 0 : i64, scratch_operands = 0 : i64, tpu.core_type = #tpu.core_type<tc>, window_params = [{transform_indices = @transform_0, window_bounds = array<i64: 8, 32>}, {pipeline_mode = #tpu.pipeline_mode<synchronous>, transform_indices = @transform_1, window_bounds = array<i64: 32, 128>}, {pipeline_mode = #tpu.pipeline_mode<synchronous>, transform_indices = @transform_2, window_bounds = array<i64: 1, 128>}, {pipeline_mode = #tpu.pipeline_mode<synchronous>, transform_indices = @transform_3, window_bounds = array<i64: 128, 128>}, {pipeline_mode = #tpu.pipeline_mode<synchronous>, transform_indices = @transform_4, window_bounds = array<i64: 1, 128>}, {pipeline_mode = #tpu.pipeline_mode<synchronous>, transform_indices = @transform_5, window_bounds = array<i64: 128, 128>}, {pipeline_mode = #tpu.pipeline_mode<synchronous>, transform_indices = @transform_6, window_bounds = array<i64: 1, 128>}, {pipeline_mode = #tpu.pipeline_mode<synchronous>, transform_indices = @transform_7, window_bounds = array<i64: 128, 2>}, {pipeline_mode = #tpu.pipeline_mode<synchronous>, transform_indices = @transform_8, window_bounds = array<i64: 1, 2>}, {transform_indices = @transform_9, window_bounds = array<i64: 8, 2>}]} {
    %c0 = arith.constant 0 : index
    %c0_0 = arith.constant 0 : index
    %0 = vector.load %arg1[%c0, %c0_0] : memref<8x32xf32, #tpu.memory_space<vmem>>, vector<8x32xf32>
    %c0_1 = arith.constant 0 : index
    %c0_2 = arith.constant 0 : index
    %1 = vector.load %arg2[%c0_1, %c0_2] : memref<32x128xf32, #tpu.memory_space<vmem>>, vector<32x128xf32>
    %cst = arith.constant dense<0.000000e+00> : vector<8x128xf32>
    %2 = tpu.matmul %0, %1, %cst {dimension_numbers = #tpu.dot_dimension_numbers<[1], [0], [0], [1], [0, 0, 1, 1], [], []>} : vector<8x32xf32>, vector<32x128xf32>, vector<8x128xf32> -> vector<8x128xf32>
    %c0_3 = arith.constant 0 : index
    %c0_4 = arith.constant 0 : index
    %3 = vector.load %arg3[%c0_3, %c0_4] : memref<1x128xf32, #tpu.memory_space<vmem>>, vector<1x128xf32>
    %4 = vector.broadcast %3 : vector<1x128xf32> to vector<8x128xf32>
    %5 = arith.addf %2, %4 : vector<8x128xf32>
    %cst_5 = arith.constant 0.000000e+00 : f32
    %6 = vector.broadcast %cst_5 : f32 to vector<8x128xf32>
    %7 = arith.maximumf %5, %6 : vector<8x128xf32>
    %c0_6 = arith.constant 0 : index
    %c0_7 = arith.constant 0 : index
    %8 = vector.load %arg4[%c0_6, %c0_7] : memref<128x128xf32, #tpu.memory_space<vmem>>, vector<128x128xf32>
    %cst_8 = arith.constant dense<0.000000e+00> : vector<8x128xf32>
    %9 = tpu.matmul %7, %8, %cst_8 {dimension_numbers = #tpu.dot_dimension_numbers<[1], [0], [0], [1], [0, 0, 1, 1], [], []>} : vector<8x128xf32>, vector<128x128xf32>, vector<8x128xf32> -> vector<8x128xf32>
    %c0_9 = arith.constant 0 : index
    %c0_10 = arith.constant 0 : index
    %10 = vector.load %arg5[%c0_9, %c0_10] : memref<1x128xf32, #tpu.memory_space<vmem>>, vector<1x128xf32>
    %11 = vector.broadcast %10 : vector<1x128xf32> to vector<8x128xf32>
    %12 = arith.addf %9, %11 : vector<8x128xf32>
    %cst_11 = arith.constant 0.000000e+00 : f32
    %13 = vector.broadcast %cst_11 : f32 to vector<8x128xf32>
    %14 = arith.maximumf %12, %13 : vector<8x128xf32>
    %c0_12 = arith.constant 0 : index
    %c0_13 = arith.constant 0 : index
    %15 = vector.load %arg6[%c0_12, %c0_13] : memref<128x128xf32, #tpu.memory_space<vmem>>, vector<128x128xf32>
    %cst_14 = arith.constant dense<0.000000e+00> : vector<8x128xf32>
    %16 = tpu.matmul %14, %15, %cst_14 {dimension_numbers = #tpu.dot_dimension_numbers<[1], [0], [0], [1], [0, 0, 1, 1], [], []>} : vector<8x128xf32>, vector<128x128xf32>, vector<8x128xf32> -> vector<8x128xf32>
    %c0_15 = arith.constant 0 : index
    %c0_16 = arith.constant 0 : index
    %17 = vector.load %arg7[%c0_15, %c0_16] : memref<1x128xf32, #tpu.memory_space<vmem>>, vector<1x128xf32>
    %18 = vector.broadcast %17 : vector<1x128xf32> to vector<8x128xf32>
    %19 = arith.addf %16, %18 : vector<8x128xf32>
    %cst_17 = arith.constant 0.000000e+00 : f32
    %20 = vector.broadcast %cst_17 : f32 to vector<8x128xf32>
    %21 = arith.maximumf %19, %20 : vector<8x128xf32>
    %c0_18 = arith.constant 0 : index
    %c0_19 = arith.constant 0 : index
    %22 = vector.load %arg8[%c0_18, %c0_19] : memref<128x2xf32, #tpu.memory_space<vmem>>, vector<128x2xf32>
    %cst_20 = arith.constant dense<0.000000e+00> : vector<8x2xf32>
    %23 = tpu.matmul %21, %22, %cst_20 {dimension_numbers = #tpu.dot_dimension_numbers<[1], [0], [0], [1], [0, 0, 1, 1], [], []>} : vector<8x128xf32>, vector<128x2xf32>, vector<8x2xf32> -> vector<8x2xf32>
    %c0_21 = arith.constant 0 : index
    %c0_22 = arith.constant 0 : index
    %24 = vector.load %arg9[%c0_21, %c0_22] : memref<1x2xf32, #tpu.memory_space<vmem>>, vector<1x2xf32>
    %25 = vector.broadcast %24 : vector<1x2xf32> to vector<8x2xf32>
    %26 = arith.addf %23, %25 : vector<8x2xf32>
    %c0_23 = arith.constant 0 : index
    %c0_24 = arith.constant 0 : index
    %27 = vector.load %arg10[%c0_23, %c0_24] : memref<8x2xf32, #tpu.memory_space<vmem>>, vector<8x2xf32>
    tpu.vector_store %arg10[%c0_23, %c0_24], %26 {strides = array<i32>} : memref<8x2xf32, #tpu.memory_space<vmem>>, vector<8x2xf32>,
    return
  }
  func.func @transform_0(%arg0: i32) -> (i32, i32) {
    %c0_i32 = arith.constant 0 : i32
    %c0_i32_0 = arith.constant 0 : i32
    return %arg0, %c0_i32 : i32, i32
  }
  func.func @transform_1(%arg0: i32) -> (i32, i32) {
    %c0_i32 = arith.constant 0 : i32
    %c0_i32_0 = arith.constant 0 : i32
    %c0_i32_1 = arith.constant 0 : i32
    return %c0_i32, %c0_i32_0 : i32, i32
  }
  func.func @transform_2(%arg0: i32) -> (i32, i32) {
    %c0_i32 = arith.constant 0 : i32
    %c0_i32_0 = arith.constant 0 : i32
    %c0_i32_1 = arith.constant 0 : i32
    return %c0_i32, %c0_i32_0 : i32, i32
  }
  func.func @transform_3(%arg0: i32) -> (i32, i32) {
    %c0_i32 = arith.constant 0 : i32
    %c0_i32_0 = arith.constant 0 : i32
    %c0_i32_1 = arith.constant 0 : i32
    return %c0_i32, %c0_i32_0 : i32, i32
  }
  func.func @transform_4(%arg0: i32) -> (i32, i32) {
    %c0_i32 = arith.constant 0 : i32
    %c0_i32_0 = arith.constant 0 : i32
    %c0_i32_1 = arith.constant 0 : i32
    return %c0_i32, %c0_i32_0 : i32, i32
  }
  func.func @transform_5(%arg0: i32) -> (i32, i32) {
    %c0_i32 = arith.constant 0 : i32
    %c0_i32_0 = arith.constant 0 : i32
    %c0_i32_1 = arith.constant 0 : i32
    return %c0_i32, %c0_i32_0 : i32, i32
  }
  func.func @transform_6(%arg0: i32) -> (i32, i32) {
    %c0_i32 = arith.constant 0 : i32
    %c0_i32_0 = arith.constant 0 : i32
    %c0_i32_1 = arith.constant 0 : i32
    return %c0_i32, %c0_i32_0 : i32, i32
  }
  func.func @transform_7(%arg0: i32) -> (i32, i32) {
    %c0_i32 = arith.constant 0 : i32
    %c0_i32_0 = arith.constant 0 : i32
    %c0_i32_1 = arith.constant 0 : i32
    return %c0_i32, %c0_i32_0 : i32, i32
  }
  func.func @transform_8(%arg0: i32) -> (i32, i32) {
    %c0_i32 = arith.constant 0 : i32
    %c0_i32_0 = arith.constant 0 : i32
    %c0_i32_1 = arith.constant 0 : i32
    return %c0_i32, %c0_i32_0 : i32, i32
  }
  func.func @transform_9(%arg0: i32) -> (i32, i32) {
    %c0_i32 = arith.constant 0 : i32
    %c0_i32_0 = arith.constant 0 : i32
    return %arg0, %c0_i32 : i32, i32
  }
}

</mosaic_0001>

<bundles_post_ra>
// kernel: tpu_custom_call.1
= control target key start
LH: loop header
LB: loop body
LE: loop exit
PB: predicated region body
PF: predicated region fallthrough
CT: control target
= control target key end

     0   :  { %14 = vsyncpa [#allocation3], 0  ;;  %s975_s0 = inlined_call_operand.vmem [shape: f32[8,32], index: 0, kind: input, shape index: {}]   ;;  %s976_s1 = inlined_call_operand.hbm [shape: f32[32,128], index: 1, kind: input, shape index: {}]   ;;  %s977_s2 = inlined_call_operand.vmem [shape: f32[1,128], index: 2, kind: input, shape index: {}]   ;;  %s978_s3 = inlined_call_operand.vmem [shape: f32[128,128], index: 3, kind: input, shape index: {}]   ;;  %s979_s4 = inlined_call_operand.vmem [shape: f32[1,128], index: 4, kind: input, shape index: {}]   ;;  %s980_s5 = inlined_call_operand.hbm [shape: f32[128,128], index: 5, kind: input, shape index: {}]   ;;  %s981_s6 = inlined_call_operand.vmem [shape: f32[1,128], index: 6, kind: input, shape index: {}]   ;;  %s982_s7 = inlined_call_operand.vmem [shape: f32[128,2], index: 7, kind: input, shape index: {}]   ;;  %s983_s8 = inlined_call_operand.vmem [shape: f32[1,2], index: 8, kind: input, shape index: {}]   ;;  %s984_s9 = inlined_call_operand.vmem [shape: f32[8,2], index: 9, kind: output, shape index: {}]  }
   0x1   :  { %15 = vsyncpa [#allocation5], 0  ;;  %s746_s30 = smov [#allocation2]   ;;  %s698_s13 = scalar_lea.hbm %s976_s1, 512 }
   0x2   :  { %s23_s10 = sshll.u32 %s746_s30, 4  ;;  %p699_p0 = scmp.ne.s32.totalorder %s976_s1, %s698_s13  ;;  %s24_s10 = int_to_ptr.vmem [resolvable:$true] %s23_s10 }
   0x3   :  { %p702_p1 = scmp.lt.u32.totalorder %s698_s13, %s976_s1 }
   0x5   :  { %p704_p2 = pnand %p702_p1, %p699_p0 }
   0x7   :  { %707 = shalt.err (!%p704_p2)
}
   0x8   :  { %s708_s18 = scalar_lea.vmem %s24_s10, 512  ;;  %p713_p4 = scmp.lt.s32.totalorder %s24_s10, %s24_s10 }
   0x9   :  { %p709_p3 = scmp.ne.s32.totalorder %s24_s10, %s708_s18  ;;  %p714_p5 = scmp.lt.s32.totalorder %s708_s18, %s708_s18 }
   0xb   :  { %p715_p6 = por %p714_p5, %p713_p4 }
   0xd   :  { %p716_p7 = pnand %p715_p6, %p709_p3 }
   0xf   :  { %719 = shalt.err (!%p716_p7)
}
  0x10   :  { %s747_s19 = smov 128   ;;  %s748_s20 = smov 8  }
  0x11   :  { %29 = dma.hbm_to_vmem [thread:$0]  %s976_s1, 512, %s24_s10, [#allocation3], %s747_s19, %s747_s19, %s748_s20  }
  0x12   :  { %s749_s23 = smov [#allocation4]   ;;  %s720_s27 = scalar_lea.hbm %s980_s5, 2048 }
  0x13   :  { %s41_s24 = sshll.u32 %s749_s23, 4  ;;  %p721_p8 = scmp.ne.s32.totalorder %s980_s5, %s720_s27  ;;  %s42_s24 = int_to_ptr.vmem [resolvable:$true] %s41_s24 }
  0x14   :  { %p724_p9 = scmp.lt.u32.totalorder %s720_s27, %s980_s5 }
  0x16   :  { %p726_p10 = pnand %p724_p9, %p721_p8 }
  0x18   :  { %729 = shalt.err (!%p726_p10)
}
  0x19   :  { %s730_s12 = scalar_lea.vmem %s42_s24, 2048  ;;  %p735_p12 = scmp.lt.s32.totalorder %s42_s24, %s42_s24 }
  0x1a   :  { %p731_p11 = scmp.ne.s32.totalorder %s42_s24, %s730_s12  ;;  %p736_p13 = scmp.lt.s32.totalorder %s730_s12, %s730_s12 }
  0x1c   :  { %p737_p0 = por %p736_p13, %p735_p12 }
  0x1e   :  { %p738_p1 = pnand %p737_p0, %p731_p11 }
  0x20   :  { %741 = shalt.err (!%p738_p1)
}
  0x21   :  { %47 = dma.hbm_to_vmem [thread:$0]  %s980_s5, 2048, %s42_s24, [#allocation5], %s747_s19, %s747_s19, %s748_s20  }
  0x22   :  { %742 = dma.done.wait [#allocation3], 512  }
  0x23   :  { %743 = vsyncadd [#allocation3], 4294966784 }
  0x24   :  { %744 = dma.done.wait [#allocation5], 2048  }
  0x25   :  { %745 = vsyncadd [#allocation5], 4294965248  ;;  %v750_v0 = vmov 0.0|0.0   ;;  %vm751_vm0 = vmmov 0   ;;  %v752_v1 = vmov 0.0   ;;  %v61_v2 = vld [vmem:[#allocation2] sm:$0xff] }
  0x26   :  { %613 = vmatprep.subr.bf16.mxu0 %v750_v0  ;;  %505 = vmatprep.mubr.msk.f32.mxu0 %vm751_vm0, %v752_v1  ;;  %v62_v3 = vld [vmem:[#allocation2 + $0x8] sm:$0xff]  ;;  %v63_v4 = vld [vmem:[#allocation2 + $0x10] sm:$0xff]  ;;  %v64_v6 = vld [vmem:[#allocation2 + $0x18] sm:$0xff]  ;;  %vm72_vm1 = vcmask 261120   ;;  %vm428_vm2 = vcmask 15360  }
  0x27   :  { %619 = vmatprep.subr.bf16.mxu1 %v750_v0  ;;  %540 = vmatprep.mubr.msk.f32.mxu1 %vm751_vm0, %v752_v1  ;;  %v614_v5 = vpack.c.bf16 %v62_v3, %v61_v2  ;;  %v147_v7 = vld [vmem:[%s978_s3] sm:$0xff]  ;;  %v148_v8 = vld [vmem:[%s978_s3 + $0x8] sm:$0xff]  ;;  %v149_v9 = vld [vmem:[%s978_s3 + $0x10] sm:$0xff]  ;;  %v617_v11 = vpack.c.bf16 %v64_v6, %v63_v4 }
  0x28   :  { %v150_v10 = vld [vmem:[%s978_s3 + $0x18] sm:$0xff]  ;;  %v620_v12 = vpack.c.bf16 %v148_v8, %v147_v7  ;;  %v151_v14 = vld [vmem:[%s978_s3 + $0x20] sm:$0xff]  ;;  %v152_v15 = vld [vmem:[%s978_s3 + $0x28] sm:$0xff] }
  0x29   :  { %615 = vmatpush3.bf16.msra.mxu0 %v614_v5  ;;  %v623_v13 = vpack.c.bf16 %v150_v10, %v149_v9  ;;  %v60_v16 = vld [vmem:[%s975_s0] sm:$0xff]  ;;  %v626_v17 = vpack.c.bf16 %v152_v15, %v151_v14  ;;  %v153_v18 = vld [vmem:[%s978_s3 + $0x30] sm:$0xff]  ;;  %v154_v19 = vld [vmem:[%s978_s3 + $0x38] sm:$0xff] }
  0x2a   :  { %616 = vmatprep.subr.bf16.mxu0 %v750_v0  ;;  %621 = vmatpush3.bf16.msra.mxu1 %v620_v12  ;;  %v629_v20 = vpack.c.bf16 %v154_v19, %v153_v18  ;;  %v155_v21 = vld [vmem:[%s978_s3 + $0x40] sm:$0xff]  ;;  %v156_v22 = vld [vmem:[%s978_s3 + $0x48] sm:$0xff]  ;;  %v157_v24 = vld [vmem:[%s978_s3 + $0x50] sm:$0xff] }
  0x2b   :  { %622 = vmatprep.subr.bf16.mxu1 %v750_v0  ;;  %v632_v23 = vpack.c.bf16 %v156_v22, %v155_v21  ;;  %v158_v25 = vld [vmem:[%s978_s3 + $0x58] sm:$0xff]  ;;  %v159_v27 = vld [vmem:[%s978_s3 + $0x60] sm:$0xff]  ;;  %v160_v28 = vld [vmem:[%s978_s3 + $0x68] sm:$0xff] }
  0x2c   :  { %v635_v26 = vpack.c.bf16 %v158_v25, %v157_v24  ;;  %v638_v29 = vpack.c.bf16 %v160_v28, %v159_v27  ;;  %v161_v30 = vld [vmem:[%s978_s3 + $0x70] sm:$0xff]  ;;  %v162_v31 = vld [vmem:[%s978_s3 + $0x78] sm:$0xff]  ;;  %v241_v33 = vld [vmem:[#allocation4] sm:$0xff] }
  0x2d   :  { %618 = vmatpush3.bf16.msra.mxu0 %v617_v11  ;;  %v641_v32 = vpack.c.bf16 %v162_v31, %v161_v30  ;;  %v242_v34 = vld [vmem:[#allocation4 + $0x8] sm:$0xff]  ;;  %v243_v35 = vld [vmem:[#allocation4 + $0x10] sm:$0xff]  ;;  %v244_v37 = vld [vmem:[#allocation4 + $0x18] sm:$0xff] }
  0x2e   :  { %643 = vmatprep.subr.bf16.mxu0 %v750_v0  ;;  %624 = vmatpush3.bf16.msra.mxu1 %v623_v13  ;;  %v644_v36 = vpack.c.bf16 %v242_v34, %v241_v33  ;;  %v647_v38 = vpack.c.bf16 %v244_v37, %v243_v35  ;;  %v245_v39 = vld [vmem:[#allocation4 + $0x20] sm:$0xff]  ;;  %v246_v40 = vld [vmem:[#allocation4 + $0x28] sm:$0xff]  ;;  %v247_v42 = vld [vmem:[#allocation4 + $0x30] sm:$0xff] }
  0x2f   :  { %625 = vmatprep.subr.bf16.mxu1 %v750_v0  ;;  %v650_v41 = vpack.c.bf16 %v246_v40, %v245_v39  ;;  %v248_v43 = vld [vmem:[#allocation4 + $0x38] sm:$0xff]  ;;  %v249_v45 = vld [vmem:[#allocation4 + $0x40] sm:$0xff]  ;;  %v250_v46 = vld [vmem:[#allocation4 + $0x48] sm:$0xff] }
  0x30   :  { %506 = vmatmul.mubr.msk.f32.vlgmr.msra.gmra.mrb[0].mxu0 %vm72_vm1, %v60_v16  ;;  %v653_v44 = vpack.c.bf16 %v248_v43, %v247_v42  ;;  %v656_v47 = vpack.c.bf16 %v250_v46, %v249_v45  ;;  %v251_v48 = vld [vmem:[#allocation4 + $0x50] sm:$0xff]  ;;  %v252_v49 = vld [vmem:[#allocation4 + $0x58] sm:$0xff]  ;;  %v253_v51 = vld [vmem:[#allocation4 + $0x60] sm:$0xff] }
  0x31   :  { %575 = vmatprep.mubr.msk.f32.mxu0 %vm751_vm0, %v752_v1  ;;  %645 = vmatpush3.bf16.msra.mxu0 %v644_v36  ;;  %v659_v50 = vpack.c.bf16 %v252_v49, %v251_v48  ;;  %v254_v52 = vld [vmem:[#allocation4 + $0x68] sm:$0xff]  ;;  %v436_v54 = vld [vmem:[%s977_s2] ss:$0 sm:$0xff]  ;;  %v255_v59 = vld [vmem:[#allocation4 + $0x70] sm:$0xff] }
  0x32   :  { %627 = vmatpush3.bf16.msra.mxu1 %v626_v17  ;;  %646 = vmatprep.subr.bf16.mxu0 %v750_v0  ;;  %v662_v53 = vpack.c.bf16 %v254_v52, %v253_v51  ;;  %v256_v60 = vld [vmem:[#allocation4 + $0x78] sm:$0xff]  ;;  %v335_v62 = vld [vmem:[%s982_s7] sm:$0xff]  ;;  %v336_v63 = vld [vmem:[%s982_s7 + $0x8] sm:$0xff] }
  0x33   :  { %628 = vmatprep.subr.bf16.mxu1 %v750_v0  ;;  %v665_v61 = vpack.c.bf16 %v256_v60, %v255_v59  ;;  %v337_v2 = vld [vmem:[%s982_s7 + $0x10] sm:$0xff]  ;;  %v668_v3 = vpack.c.bf16 %v336_v63, %v335_v62  ;;  %v339_v5 = vld [vmem:[%s982_s7 + $0x20] sm:$0xff]  ;;  %v340_v6 = vld [vmem:[%s982_s7 + $0x28] sm:$0xff] }
  0x34   :  { %v674_v7 = vpack.c.bf16 %v340_v6, %v339_v5  ;;  %v341_v8 = vld [vmem:[%s982_s7 + $0x30] sm:$0xff]  ;;  %v342_v9 = vld [vmem:[%s982_s7 + $0x38] sm:$0xff]  ;;  %v343_v11 = vld [vmem:[%s982_s7 + $0x40] sm:$0xff] }
  0x35   :  { %648 = vmatpush3.bf16.msra.mxu0 %v647_v38  ;;  %v677_v10 = vpack.c.bf16 %v342_v9, %v341_v8  ;;  %v344_v12 = vld [vmem:[%s982_s7 + $0x48] sm:$0xff]  ;;  %v345_v14 = vld [vmem:[%s982_s7 + $0x50] sm:$0xff]  ;;  %v346_v15 = vld [vmem:[%s982_s7 + $0x58] sm:$0xff] }
  0x36   :  { %630 = vmatpush3.bf16.msra.mxu1 %v629_v20  ;;  %649 = vmatprep.subr.bf16.mxu0 %v750_v0  ;;  %v680_v13 = vpack.c.bf16 %v344_v12, %v343_v11  ;;  %v683_v16 = vpack.c.bf16 %v346_v15, %v345_v14  ;;  %v347_v17 = vld [vmem:[%s982_s7 + $0x60] sm:$0xff]  ;;  %v348_v18 = vld [vmem:[%s982_s7 + $0x68] sm:$0xff]  ;;  %v349_v25 = vld [vmem:[%s982_s7 + $0x70] sm:$0xff] }
  0x37   :  { %631 = vmatprep.subr.bf16.mxu1 %v750_v0  ;;  %v686_v19 = vpack.c.bf16 %v348_v18, %v347_v17  ;;  %v438_v20 = vld [vmem:[%s979_s4] ss:$0 sm:$0xff] }
  0x39   :  { %651 = vmatpush3.bf16.msra.mxu0 %v650_v41 }
  0x3a   :  { %633 = vmatpush3.bf16.msra.mxu1 %v632_v23  ;;  %652 = vmatprep.subr.bf16.mxu0 %v750_v0 }
  0x3b   :  { %634 = vmatprep.subr.bf16.mxu1 %v750_v0 }
  0x3d   :  { %654 = vmatpush3.bf16.msra.mxu0 %v653_v44 }
  0x3e   :  { %636 = vmatpush3.bf16.msra.mxu1 %v635_v26  ;;  %655 = vmatprep.subr.bf16.mxu0 %v750_v0  ;;  %v350_v26 = vld [vmem:[%s982_s7 + $0x78] sm:$0xff] }
  0x3f   :  { %637 = vmatprep.subr.bf16.mxu1 %v750_v0  ;;  %v689_v27 = vpack.c.bf16 %v350_v26, %v349_v25 }
  0x41   :  { %657 = vmatpush3.bf16.msra.mxu0 %v656_v47 }
  0x42   :  { %639 = vmatpush3.bf16.msra.mxu1 %v638_v29  ;;  %658 = vmatprep.subr.bf16.mxu0 %v750_v0 }
  0x43   :  { %640 = vmatprep.subr.bf16.mxu1 %v750_v0 }
  0x45   :  { %660 = vmatpush3.bf16.msra.mxu0 %v659_v50 }
  0x46   :  { %642 = vmatpush3.bf16.msra.mxu1 %v641_v32  ;;  %661 = vmatprep.subr.bf16.mxu0 %v750_v0  ;;  %v440_v32 = vld [vmem:[%s983_s8] ss:$0 sm:$0xff] }
  0x47   :  { %667 = vmatprep.subr.bf16.mxu1 %v750_v0 }
  0x49   :  { %663 = vmatpush3.bf16.msra.mxu0 %v662_v53 }
  0x4a   :  { %664 = vmatprep.subr.bf16.mxu0 %v750_v0 }
  0x4d   :  { %666 = vmatpush3.bf16.msra.mxu0 %v665_v61 }
 0x103   :  { %v142_v55 = vpop.f32.mrb[0].mxu0 }
 0x104   :  { %v143_v56 = vadd.f32 %v436_v54, %v142_v55  ;;  %v507_v57 = vpop.f32.mrb[1].mxu0 }
 0x106   :  { %v146_v58 = vmax.f32 %v143_v56, 0.0 }
 0x108   :  { %541 = vmatmul.mubr.f32.vlgmr.msra.gmra.mrb[0].mxu1 %v146_v58 }
 0x109   :  { %610 = vmatprep.mubr.msk.f32.mxu1 %vm751_vm0, %v752_v1  ;;  %v338_v1 = vld [vmem:[%s982_s7 + $0x18] sm:$0xff]  ;;  %669 = vmatpush3.bf16.msra.mxu1 %v668_v3 }
 0x10a   :  { %v671_v4 = vpack.c.bf16 %v338_v1, %v337_v2  ;;  %670 = vmatprep.subr.bf16.mxu1 %v750_v0 }
 0x10d   :  { %672 = vmatpush3.bf16.msra.mxu1 %v671_v4 }
 0x10e   :  { %673 = vmatprep.subr.bf16.mxu1 %v750_v0 }
 0x111   :  { %675 = vmatpush3.bf16.msra.mxu1 %v674_v7 }
 0x112   :  { %676 = vmatprep.subr.bf16.mxu1 %v750_v0 }
 0x115   :  { %678 = vmatpush3.bf16.msra.mxu1 %v677_v10 }
 0x116   :  { %679 = vmatprep.subr.bf16.mxu1 %v750_v0 }
 0x119   :  { %681 = vmatpush3.bf16.msra.mxu1 %v680_v13 }
 0x11a   :  { %682 = vmatprep.subr.bf16.mxu1 %v750_v0 }
 0x11d   :  { %684 = vmatpush3.bf16.msra.mxu1 %v683_v16 }
 0x11e   :  { %685 = vmatprep.subr.bf16.mxu1 %v750_v0 }
 0x121   :  { %687 = vmatpush3.bf16.msra.mxu1 %v686_v19 }
 0x122   :  { %688 = vmatprep.subr.bf16.mxu1 %v750_v0  ;;  %v439_v0 = vld [vmem:[%s981_s6] ss:$0 sm:$0xff] }
 0x125   :  { %690 = vmatpush3.bf16.msra.mxu1 %v689_v27 }
 0x1db   :  { %v236_v21 = vpop.f32.mrb[0].mxu1 }
 0x1dc   :  { %v237_v22 = vadd.f32 %v438_v20, %v236_v21  ;;  %v542_v23 = vpop.f32.mrb[1].mxu1 }
 0x1de   :  { %v240_v24 = vmax.f32 %v237_v22, 0.0 }
 0x1e0   :  { %576 = vmatmul.mubr.f32.vlgmr.msra.gmra.mrb[2].mxu0 %v240_v24 }
 0x2b3   :  { %v330_v28 = vpop.f32.mrb[2].mxu0 }
 0x2b4   :  { %v331_v29 = vadd.f32 %v439_v0, %v330_v28  ;;  %v577_v30 = vpop.f32.mrb[3].mxu0 }
 0x2b6   :  { %v334_v31 = vmax.f32 %v331_v29, 0.0 }
 0x2b8   :  { %611 = vmatmul.mubr.f32.vlgmr.msra.gmra.mrb[2].mxu1 %v334_v31 }
 0x38b   :  { %v424_v33 = vpop.f32.mrb[2].mxu1 }
 0x38c   :  { %v425_v34 = vadd.f32 %v440_v32, %v424_v33  ;;  %v612_v35 = vpop.f32.mrb[3].mxu1 }
 0x38e   :  { %429 = vst.msk [vmem:[%s984_s9] sm:$0xff] %vm428_vm2, %v425_v34 }
 0x38f   :  { %434 = vsyncpa [#allocation3], 1 }
 0x390   :  { %435 = vsyncpa [#allocation5], 1 }

</bundles_post_ra>
